<compile_context>
chip_gen: v5e
topology: v5e:2x2
jax: 0.10.0
libtpu: 0.0.40
codegen_flags: <defaults>
</compile_context>

<pallas_src>
import functools

import jax
import jax.numpy as jnp
from jax.experimental import pallas as pl
from jax.experimental.pallas import tpu as pltpu


# ----------------------------- pltpu.roll availability probe -----------------

_ROLL_OK = None


def _roll_supported():
    """Check (once) that pltpu.roll lowers and matches jnp.roll semantics."""
    global _ROLL_OK
    if _ROLL_OK is not None:
        return _ROLL_OK
    try:
        def _k(x_ref, o_ref):
            o_ref[...] = pltpu.roll(x_ref[...], 1, 1)

        x = jnp.arange(2 * 8 * 32, dtype=jnp.float32).reshape(2, 8, 32)
        y = pl.pallas_call(_k, out_shape=jax.ShapeDtypeStruct(x.shape, x.dtype))(x)
        _ROLL_OK = bool(jnp.array_equal(y, jnp.roll(x, 1, axis=1)))
    except Exception:
        _ROLL_OK = False
    return _ROLL_OK


def _shift_rows(v, direction, use_roll):
    """(TB, P, C): v[:, p-1, :] (direction=+1) or v[:, p+1, :] (direction=-1),
    zero at the boundary row.  Uses the XLU (pltpu.roll) when available,
    otherwise a slice+concatenate copy."""
    P = v.shape[1]
    if use_roll:
        shift = 1 if direction > 0 else P - 1
        r = pltpu.roll(v, shift, 1)
        edge = 0 if direction > 0 else P - 1
        idx = jax.lax.broadcasted_iota(jnp.int32, v.shape, 1)
        return jnp.where(idx == edge, jnp.zeros_like(r), r)
    zrow = jnp.zeros((v.shape[0], 1, v.shape[2]), v.dtype)
    if direction > 0:
        return jnp.concatenate([zrow, v[:, :P - 1, :]], axis=1)
    return jnp.concatenate([v[:, 1:, :], zrow], axis=1)


# ----------------------------- the fused Pallas kernel -----------------------

def rcnn_kernel(xe_ref, xo_ref,
                w1a_ref, b1a_ref, w12_ref, b12_ref,
                w2a_ref, b2a_ref, w22_ref, b22_ref,
                wf1_ref, bf1_ref, wf2_ref, bf2_ref,
                out_ref, *, use_roll):
    f32 = jnp.float32
    bf16 = jnp.bfloat16
    TB, P = xe_ref.shape                    # P = L // 2 (stride-2 positions)
    R = TB * P

    def shift(v, d):
        return _shift_rows(v, d, use_roll)

    # --- Block 1, stage 1: conv1(1->32,k3,s1,p1)+BN fused with the 1x1
    #     shortcut+BN, computed for an even/odd position pair per row so the
    #     output slab is lane-dense 128 wide (VPU broadcast-FMAs):
    #     lanes = [conv@2p | conv@2p+1 | shortcut@2p | shortcut@2p+1].
    xe2 = xe_ref[...]                                         # x[2p]   (TB, P)
    xo2 = xo_ref[...]                                         # x[2p+1] (TB, P)
    zcol = jnp.zeros((TB, 1), f32)
    xm1 = jnp.concatenate([zcol, xo2[:, :P - 1]], axis=1)     # x[2p-1]
    xp2 = jnp.concatenate([xe2[:, 1:], zcol], axis=1)         # x[2p+2]
    w1a = w1a_ref[...]                                        # (4, 128) f32
    z1 = (xm1[:, :, None] * w1a[0] + xe2[:, :, None] * w1a[1]
          + xo2[:, :, None] * w1a[2] + xp2[:, :, None] * w1a[3]
          + b1a_ref[...])                                     # (TB, P, 128)
    a_even = jnp.maximum(z1[:, :, 0:32], 0.0)                 # relu(conv1+bn1)@2p
    a_odd = jnp.maximum(z1[:, :, 32:64], 0.0)                 # @2p+1
    r1 = z1[:, :, 64:128]                                     # paired residual

    # --- Block 1, stage 2: conv2(32->32,k3,s1,p1)+BN for the even/odd pair as
    #     ONE lane-dense (K=128, N=64) matmul; im2col slab built in bf16.
    colp = jnp.concatenate(
        [shift(a_odd, +1).astype(bf16),                       # a[2p-1]
         a_even.astype(bf16),                                 # a[2p]
         a_odd.astype(bf16),                                  # a[2p+1]
         shift(a_even, -1).astype(bf16)],                     # a[2p+2]
        axis=-1)                                              # (TB, P, 128)
    z1b = jnp.dot(colp.reshape(R, 128), w12_ref[...],
                  preferred_element_type=f32) + b12_ref[...]  # (R, 64)
    # TODO(synk): nn.Dropout layers are identity in eval mode; no masking here.
    h = jnp.maximum(z1b + r1.reshape(R, 64), 0.0).reshape(TB, P, 64)
    h_even = h[:, :, 0:32]                                    # h[2p]
    h_odd = h[:, :, 32:64]                                    # h[2p+1]

    # --- Block 2, stage 1: conv1(32->64,k3,s2,p1)+BN and the 1x1 stride-2
    #     shortcut+BN fused into ONE (K=96, N=128) matmul, evaluated only at
    #     the L/2 stride-2 positions (paired layout -> no strided loads).
    col2 = jnp.concatenate(
        [shift(h_odd, +1).astype(bf16),                       # h[2p-1]
         h_even.astype(bf16), h_odd.astype(bf16)],            # h[2p], h[2p+1]
        axis=-1)                                              # (TB, P, 96)
    z2 = jnp.dot(col2.reshape(R, 96), w2a_ref[...],
                 preferred_element_type=f32) + b2a_ref[...]   # (R, 128)
    z2 = z2.reshape(TB, P, 128)
    g = jnp.maximum(z2[:, :, 0:64], 0.0)                      # relu(conv21+bn)
    r2 = z2[:, :, 64:128]                                     # shortcut path

    # --- Block 2, stage 2: conv2(64->64,k3,s1,p1)+BN as ONE (K=192, N=64) matmul.
    col3 = jnp.concatenate(
        [shift(g, +1).astype(bf16), g.astype(bf16), shift(g, -1).astype(bf16)],
        axis=-1)                                              # (TB, P, 192)
    z3 = jnp.dot(col3.reshape(R, 192), w22_ref[...],
                 preferred_element_type=f32) + b22_ref[...]   # (R, 64)
    g2 = jnp.maximum(z3.reshape(TB, P, 64) + r2, 0.0)         # (TB, P, 64)

    # --- AdaptiveMaxPool1d(4): 4 sublane max-reduces + lane concat, then the
    #     FC head as two matmuls (PyTorch flatten order folded into wf1).
    s = P // 4
    pooled = jnp.concatenate(
        [jnp.max(g2[:, i * s:(i + 1) * s, :], axis=1) for i in range(4)],
        axis=-1)                                              # (TB, 256)
    f1 = jnp.maximum(jnp.dot(pooled.astype(bf16), wf1_ref[...],
                             preferred_element_type=f32) + bf1_ref[...], 0.0)
    out = jnp.dot(f1.astype(bf16), wf2_ref[...],
                  preferred_element_type=f32) + bf2_ref[...]
    out_ref[...] = out.astype(out_ref.dtype)


# ----------------------------- parameter setup (plain JAX glue) --------------

def make_raw_params(key, output_dim):
    keys = iter(jax.random.split(key, 64))

    def nrm(shape, scale=0.1):
        return scale * jax.random.normal(next(keys), shape, jnp.float32)

    def conv(cout, cin, k):
        return (nrm((cout, cin, k)), nrm((cout,)))            # PyTorch (Cout,Cin,K)

    def bn(c):
        gamma = 1.0 + nrm((c,), 0.05)
        beta = nrm((c,), 0.05)
        mean = nrm((c,), 0.05)
        var = 1.0 + 0.1 * jnp.abs(jax.random.normal(next(keys), (c,), jnp.float32))
        return (gamma, beta, mean, var)

    def block(cin, cout):
        return dict(conv1=conv(cout, cin, 3), bn1=bn(cout),
                    conv2=conv(cout, cout, 3), bn2=bn(cout),
                    sc_conv=conv(cout, cin, 1), sc_bn=bn(cout))

    return dict(block1=block(1, 32), block2=block(32, 64),
                fc1=(nrm((64, 256)), nrm((64,))),
                fc2=(nrm((output_dim, 64)), nrm((output_dim,))))


def prepare_kernel_params(raw):
    eps = 1e-5

    def fold(conv_p, bn_p):
        (w, b), (gamma, beta, mean, var) = conv_p, bn_p
        scale = gamma / jnp.sqrt(var + eps)
        wf = jnp.transpose(w * scale[:, None, None], (2, 1, 0))   # (K, Cin, Cout)
        bf = (b - mean) * scale + beta                            # (Cout,)
        return wf, bf

    w11, b11 = fold(raw['block1']['conv1'], raw['block1']['bn1'])     # (3,1,32)
    w12, b12 = fold(raw['block1']['conv2'], raw['block1']['bn2'])     # (3,32,32)
    ws1, bs1 = fold(raw['block1']['sc_conv'], raw['block1']['sc_bn']) # (1,1,32)
    w21, b21 = fold(raw['block2']['conv1'], raw['block2']['bn1'])     # (3,32,64)
    w22, b22 = fold(raw['block2']['conv2'], raw['block2']['bn2'])     # (3,64,64)
    ws2, bs2 = fold(raw['block2']['sc_conv'], raw['block2']['sc_bn']) # (1,32,64)

    p = {}
    # Stage-1 fused tap weights; output lanes [conv@2p|conv@2p+1|sc@2p|sc@2p+1].
    w11 = w11[:, 0, :]                                       # (3, 32)
    ws1v = ws1[0, 0, :]                                      # (32,)
    w1a = jnp.zeros((4, 128), jnp.float32)
    w1a = w1a.at[0, 0:32].set(w11[0])                        # x[2p-1] -> conv@2p k0
    w1a = w1a.at[1, 0:32].set(w11[1])                        # x[2p]   -> conv@2p k1
    w1a = w1a.at[1, 32:64].set(w11[0])                       # x[2p]   -> conv@2p+1 k0
    w1a = w1a.at[1, 64:96].set(ws1v)                         # x[2p]   -> sc@2p
    w1a = w1a.at[2, 0:32].set(w11[2])                        # x[2p+1] -> conv@2p k2
    w1a = w1a.at[2, 32:64].set(w11[1])                       # x[2p+1] -> conv@2p+1 k1
    w1a = w1a.at[2, 96:128].set(ws1v)                        # x[2p+1] -> sc@2p+1
    w1a = w1a.at[3, 32:64].set(w11[2])                       # x[2p+2] -> conv@2p+1 k2
    p['w1a'] = w1a
    p['b1a'] = jnp.concatenate([b11, b11, bs1, bs1])[None, :]       # (1, 128)

    # Block-1 conv2 in paired form: K=128 (a[2p-1],a[2p],a[2p+1],a[2p+2]),
    # N=64 ([h_conv@2p | h_conv@2p+1]).
    w12p = jnp.zeros((128, 64), jnp.float32)
    w12p = w12p.at[0:32, 0:32].set(w12[0])
    w12p = w12p.at[32:64, 0:32].set(w12[1])
    w12p = w12p.at[64:96, 0:32].set(w12[2])
    w12p = w12p.at[32:64, 32:64].set(w12[0])
    w12p = w12p.at[64:96, 32:64].set(w12[1])
    w12p = w12p.at[96:128, 32:64].set(w12[2])
    p['w12'] = w12p.astype(jnp.bfloat16)
    p['b12'] = jnp.concatenate([b12, b12])[None, :]                 # (1, 64)

    # Block-2 conv1(k3,s2)+1x1 stride-2 shortcut fused: K=96, N=128.
    w2a = jnp.zeros((96, 128), jnp.float32)
    w2a = w2a.at[0:96, 0:64].set(w21.reshape(96, 64))
    w2a = w2a.at[32:64, 64:128].set(ws2[0])                  # shortcut uses h[2p]
    p['w2a'] = w2a.astype(jnp.bfloat16)
    p['b2a'] = jnp.concatenate([b21, bs2])[None, :]                 # (1, 128)

    p['w22'] = w22.reshape(192, 64).astype(jnp.bfloat16)
    p['b22'] = b22[None, :]

    w1, b1 = raw['fc1']                                      # (64, 256), (64,)
    # PyTorch flatten order is (B, C=64, L=4) -> idx = c*4 + bin; kernel's
    # pooled feature order is bin*64 + c, so permute wf1 accordingly.
    p['wf1'] = jnp.transpose(w1.T.reshape(64, 4, 64), (1, 0, 2)) \
                  .reshape(256, 64).astype(jnp.bfloat16)
    p['bf1'] = b1[None, :]
    w2, b2 = raw['fc2']
    p['wf2'] = w2.T.astype(jnp.bfloat16)                     # (64, output_dim)
    p['bf2'] = b2[None, :]
    return p


_PARAM_ORDER = ['w1a', 'b1a', 'w12', 'b12', 'w2a', 'b2a', 'w22', 'b22',
                'wf1', 'bf1', 'wf2', 'bf2']


# ----------------------------- tiling / wrapper -------------------------------

def _vmem_capacity_bytes():
    try:
        info = pltpu.get_tpu_info()
        for name in ('vmem_capacity_bytes', 'vmem_bytes', 'vmem_size_bytes'):
            v = getattr(info, name, None)
            if v:
                return int(v)
    except Exception:
        pass
    return 64 * 1024 * 1024          # v7x per-TensorCore VMEM = tightest budget


def _vmem_limit_bytes():
    cap = _vmem_capacity_bytes()
    return int(min(max(cap * 3 // 4, 32 * 1024 * 1024), 112 * 1024 * 1024))


def _pick_tile_b(B, L, vmem_limit):
    # Rough per-sample VMEM working set (f32/bf16 intermediates incl. padding).
    per_row = 2048 * L + 8192
    cap = max(1, int(0.55 * vmem_limit) // per_row)
    cands = [B] + [t for t in range(8, B, 8) if B % t == 0]  # sublane-aligned divisors
    fit = [t for t in cands if t <= cap] or [min(cands)]
    multi = [t for t in fit if B // t >= 2]                  # feed both v7x TensorCores
    return max(multi) if multi else max(fit)


def rcnn_forward(x, kparams, *, tile_b=None):
    # x: (B, L) float32; a (B, 1, L) input is squeezed exactly like PyTorch.
    if x.ndim == 3:
        x = x[:, 0, :]
    B, L = x.shape
    assert L % 16 == 0, "L must be a multiple of 16 (even/odd pairing, 4 pool bins)"
    P = L // 2
    x = x.astype(jnp.float32)
    x_even = x[:, 0::2]               # lane-dense (B, L/2) inputs, no (.,1) block
    x_odd = x[:, 1::2]
    out_dim = kparams['wf2'].shape[1]

    vmem_limit = _vmem_limit_bytes()
    if tile_b is None:
        tile_b = _pick_tile_b(B, L, vmem_limit)
    assert B % tile_b == 0
    n_tiles = B // tile_b

    params = [kparams[k] for k in _PARAM_ORDER]

    def whole(a):
        nd = a.ndim
        return pl.BlockSpec(a.shape, lambda i, _nd=nd: (0,) * _nd)

    flops = 2 * B * (P * (4 * 128 + 128 * 64 + 96 * 128 + 192 * 64)
                     + 256 * 64 + 64 * out_dim)
    bytes_accessed = (int(x.size) * 4
                      + sum(int(p.size) * p.dtype.itemsize for p in params)
                      + B * out_dim * 4)
    cost = pl.CostEstimate(flops=int(flops), transcendentals=0,
                           bytes_accessed=int(bytes_accessed))

    kernel = functools.partial(rcnn_kernel, use_roll=_roll_supported())

    return pl.pallas_call(
        kernel,
        out_shape=jax.ShapeDtypeStruct((B, out_dim), jnp.float32),
        grid=(n_tiles,),
        in_specs=[pl.BlockSpec((tile_b, P), lambda i: (i, 0)),
                  pl.BlockSpec((tile_b, P), lambda i: (i, 0))]
                 + [whole(p) for p in params],
        out_specs=pl.BlockSpec((tile_b, out_dim), lambda i: (i, 0)),
        compiler_params=pltpu.CompilerParams(
            dimension_semantics=("parallel",),
            vmem_limit_bytes=vmem_limit),
        cost_estimate=cost,
    )(x_even, x_odd, *params)


# ----------------------------- pure-JAX reference (unfolded params) ----------

def ref_forward(x, raw):
    eps = 1e-5
    h = x[:, None, :].astype(jnp.float32)                    # NCW

    def conv(h, wb, stride, pad):
        w, b = wb
        out = jax.lax.conv_general_dilated(
            h, w, window_strides=(stride,), padding=[(pad, pad)],
            dimension_numbers=('NCH', 'OIH', 'NCH'),
            precision=jax.lax.Precision.HIGHEST)
        return out + b[None, :, None]

    def bn(h, bnp):
        gamma, beta, mean, var = bnp
        scale = gamma / jnp.sqrt(var + eps)
        return (h - mean[None, :, None]) * scale[None, :, None] + beta[None, :, None]

    def block(h, p, downsample):
        stride = 2 if downsample else 1
        res = bn(conv(h, p['sc_conv'], stride, 0), p['sc_bn'])
        out = jax.nn.relu(bn(conv(h, p['conv1'], stride, 1), p['bn1']))
        out = bn(conv(out, p['conv2'], 1, 1), p['bn2'])
        return jax.nn.relu(out + res)

    h = block(h, raw['block1'], False)
    h = block(h, raw['block2'], True)
    B, C, L2 = h.shape
    h = h.reshape(B, C, 4, L2 // 4).max(axis=3)              # AdaptiveMaxPool1d(4)
    f = h.reshape(B, C * 4)
    w1, b1 = raw['fc1']
    w2, b2 = raw['fc2']
    f = jax.nn.relu(f @ w1.T + b1)
    return f @ w2.T + b2


# ----------------------------- main -------------------------------------------

if __name__ == "__main__":
    B, L, OUT_DIM = 2, 16, 8
    key = jax.random.PRNGKey(0)
    k_x, k_p = jax.random.split(key)

    x = jax.random.normal(k_x, (B, L), jnp.float32)
    raw = make_raw_params(k_p, OUT_DIM)
    kparams = prepare_kernel_params(raw)

    y = jax.block_until_ready(rcnn_forward(x, kparams))
    y_ref = ref_forward(x, raw)

    assert y.shape == (B, OUT_DIM)
    # Kernel uses bf16 MXU operands (f32 accumulate); reference is f32 HIGHEST
    # precision, so allow a slightly wider tolerance than pure-f32 would need.
    if not jnp.allclose(y, y_ref, atol=3e-2, rtol=3e-2):
        max_err = float(jnp.max(jnp.abs(y - y_ref)))
        raise AssertionError(f"Pallas kernel mismatch vs reference, max abs err = {max_err}")

    print("KERNEL_OK")
</pallas_src>

<mosaic_0001>
module attributes {stable_mosaic.version = 11 : i64} {
  func.func @_k(%arg0: memref<2x8x32xf32, #tpu.memory_space<vmem>>, %arg1: memref<2x8x32xf32, #tpu.memory_space<vmem>>) attributes {dimension_semantics = [], scalar_prefetch = 0 : i64, scratch_operands = 0 : i64, tpu.core_type = #tpu.core_type<tc>} {
    %c0 = arith.constant 0 : index
    %c0_0 = arith.constant 0 : index
    %c0_1 = arith.constant 0 : index
    %0 = vector.load %arg0[%c0, %c0_0, %c0_1] : memref<2x8x32xf32, #tpu.memory_space<vmem>>, vector<2x8x32xf32>
    %c1_i32 = arith.constant 1 : i32
    %1 = tpu.dynamic_rotate %0 by %c1_i32 dim 1 : vector<2x8x32xf32>, i32 -> vector<2x8x32xf32>
    %c0_2 = arith.constant 0 : index
    %c0_3 = arith.constant 0 : index
    %c0_4 = arith.constant 0 : index
    %2 = vector.load %arg1[%c0_2, %c0_3, %c0_4] : memref<2x8x32xf32, #tpu.memory_space<vmem>>, vector<2x8x32xf32>
    tpu.vector_store %arg1[%c0_2, %c0_3, %c0_4], %1 {strides = array<i32>} : memref<2x8x32xf32, #tpu.memory_space<vmem>>, vector<2x8x32xf32>,
    return
  }
}

module attributes {stable_mosaic.version = 11 : i64} {
  func.func @rcnn_kernel(%arg0: i32, %arg1: memref<2x8xf32, #tpu.memory_space<vmem>>, %arg2: memref<2x8xf32, #tpu.memory_space<vmem>>, %arg3: memref<4x128xf32, #tpu.memory_space<vmem>>, %arg4: memref<1x128xf32, #tpu.memory_space<vmem>>, %arg5: memref<128x64xbf16, #tpu.memory_space<vmem>>, %arg6: memref<1x64xf32, #tpu.memory_space<vmem>>, %arg7: memref<96x128xbf16, #tpu.memory_space<vmem>>, %arg8: memref<1x128xf32, #tpu.memory_space<vmem>>, %arg9: memref<192x64xbf16, #tpu.memory_space<vmem>>, %arg10: memref<1x64xf32, #tpu.memory_space<vmem>>, %arg11: memref<256x64xbf16, #tpu.memory_space<vmem>>, %arg12: memref<1x64xf32, #tpu.memory_space<vmem>>, %arg13: memref<64x8xbf16, #tpu.memory_space<vmem>>, %arg14: memref<1x8xf32, #tpu.memory_space<vmem>>, %arg15: memref<2x8xf32, #tpu.memory_space<vmem>>) attributes {dimension_semantics = [#tpu.dimension_semantics<parallel>], iteration_bounds = array<i64: 1>, scalar_prefetch = 0 : i64, scratch_operands = 0 : i64, tpu.core_type = #tpu.core_type<tc>, window_params = [{transform_indices = @transform_0, window_bounds = array<i64: 2, 8>}, {transform_indices = @transform_1, window_bounds = array<i64: 2, 8>}, {pipeline_mode = #tpu.pipeline_mode<synchronous>, transform_indices = @transform_2, window_bounds = array<i64: 4, 128>}, {pipeline_mode = #tpu.pipeline_mode<synchronous>, transform_indices = @transform_3, window_bounds = array<i64: 1, 128>}, {pipeline_mode = #tpu.pipeline_mode<synchronous>, transform_indices = @transform_4, window_bounds = array<i64: 128, 64>}, {pipeline_mode = #tpu.pipeline_mode<synchronous>, transform_indices = @transform_5, window_bounds = array<i64: 1, 64>}, {pipeline_mode = #tpu.pipeline_mode<synchronous>, transform_indices = @transform_6, window_bounds = array<i64: 96, 128>}, {pipeline_mode = #tpu.pipeline_mode<synchronous>, transform_indices = @transform_7, window_bounds = array<i64: 1, 128>}, {pipeline_mode = #tpu.pipeline_mode<synchronous>, transform_indices = @transform_8, window_bounds = array<i64: 192, 64>}, {pipeline_mode = #tpu.pipeline_mode<synchronous>, transform_indices = @transform_9, window_bounds = array<i64: 1, 64>}, {pipeline_mode = #tpu.pipeline_mode<synchronous>, transform_indices = @transform_10, window_bounds = array<i64: 256, 64>}, {pipeline_mode = #tpu.pipeline_mode<synchronous>, transform_indices = @transform_11, window_bounds = array<i64: 1, 64>}, {pipeline_mode = #tpu.pipeline_mode<synchronous>, transform_indices = @transform_12, window_bounds = array<i64: 64, 8>}, {pipeline_mode = #tpu.pipeline_mode<synchronous>, transform_indices = @transform_13, window_bounds = array<i64: 1, 8>}, {transform_indices = @transform_14, window_bounds = array<i64: 2, 8>}]} {
    %c0 = arith.constant 0 : index
    %c0_0 = arith.constant 0 : index
    %0 = vector.load %arg1[%c0, %c0_0] : memref<2x8xf32, #tpu.memory_space<vmem>>, vector<2x8xf32>
    %c0_1 = arith.constant 0 : index
    %c0_2 = arith.constant 0 : index
    %1 = vector.load %arg2[%c0_1, %c0_2] : memref<2x8xf32, #tpu.memory_space<vmem>>, vector<2x8xf32>
    %cst = arith.constant 0.000000e+00 : f32
    %2 = vector.broadcast %cst : f32 to vector<2x1xf32>
    %3 = vector.extract_strided_slice %1 {offsets = [0, 0], sizes = [2, 7], strides = [1, 1]} : vector<2x8xf32> to vector<2x7xf32>
    %4 = tpu.concatenate %2, %3 in 1 : vector<2x1xf32>, vector<2x7xf32> -> vector<2x8xf32>
    %5 = vector.extract_strided_slice %0 {offsets = [0, 1], sizes = [2, 7], strides = [1, 1]} : vector<2x8xf32> to vector<2x7xf32>
    %6 = tpu.concatenate %5, %2 in 1 : vector<2x7xf32>, vector<2x1xf32> -> vector<2x8xf32>
    %c0_3 = arith.constant 0 : index
    %c0_4 = arith.constant 0 : index
    %7 = vector.load %arg3[%c0_3, %c0_4] : memref<4x128xf32, #tpu.memory_space<vmem>>, vector<4x128xf32>
    %8 = vector.shape_cast %4 : vector<2x8xf32> to vector<2x8x1xf32>
    %9 = vector.extract_strided_slice %7 {offsets = [0, 0], sizes = [1, 128], strides = [1, 1]} : vector<4x128xf32> to vector<1x128xf32>
    %10 = vector.shape_cast %9 : vector<1x128xf32> to vector<128xf32>
    %11 = vector.shape_cast %10 : vector<128xf32> to vector<1x1x128xf32>
    %12 = vector.broadcast %8 : vector<2x8x1xf32> to vector<2x8x128xf32>
    %13 = vector.broadcast %11 : vector<1x1x128xf32> to vector<2x8x128xf32>
    %14 = arith.mulf %12, %13 : vector<2x8x128xf32>
    %15 = vector.shape_cast %0 : vector<2x8xf32> to vector<2x8x1xf32>
    %16 = vector.extract_strided_slice %7 {offsets = [1, 0], sizes = [1, 128], strides = [1, 1]} : vector<4x128xf32> to vector<1x128xf32>
    %17 = vector.shape_cast %16 : vector<1x128xf32> to vector<128xf32>
    %18 = vector.shape_cast %17 : vector<128xf32> to vector<1x1x128xf32>
    %19 = vector.broadcast %15 : vector<2x8x1xf32> to vector<2x8x128xf32>
    %20 = vector.broadcast %18 : vector<1x1x128xf32> to vector<2x8x128xf32>
    %21 = arith.mulf %19, %20 : vector<2x8x128xf32>
    %22 = arith.addf %14, %21 : vector<2x8x128xf32>
    %23 = vector.shape_cast %1 : vector<2x8xf32> to vector<2x8x1xf32>
    %24 = vector.extract_strided_slice %7 {offsets = [2, 0], sizes = [1, 128], strides = [1, 1]} : vector<4x128xf32> to vector<1x128xf32>
    %25 = vector.shape_cast %24 : vector<1x128xf32> to vector<128xf32>
    %26 = vector.shape_cast %25 : vector<128xf32> to vector<1x1x128xf32>
    %27 = vector.broadcast %23 : vector<2x8x1xf32> to vector<2x8x128xf32>
    %28 = vector.broadcast %26 : vector<1x1x128xf32> to vector<2x8x128xf32>
    %29 = arith.mulf %27, %28 : vector<2x8x128xf32>
    %30 = arith.addf %22, %29 : vector<2x8x128xf32>
    %31 = vector.shape_cast %6 : vector<2x8xf32> to vector<2x8x1xf32>
    %32 = vector.extract_strided_slice %7 {offsets = [3, 0], sizes = [1, 128], strides = [1, 1]} : vector<4x128xf32> to vector<1x128xf32>
    %33 = vector.shape_cast %32 : vector<1x128xf32> to vector<128xf32>
    %34 = vector.shape_cast %33 : vector<128xf32> to vector<1x1x128xf32>
    %35 = vector.broadcast %31 : vector<2x8x1xf32> to vector<2x8x128xf32>
    %36 = vector.broadcast %34 : vector<1x1x128xf32> to vector<2x8x128xf32>
    %37 = arith.mulf %35, %36 : vector<2x8x128xf32>
    %38 = arith.addf %30, %37 : vector<2x8x128xf32>
    %c0_5 = arith.constant 0 : index
    %c0_6 = arith.constant 0 : index
    %39 = vector.load %arg4[%c0_5, %c0_6] : memref<1x128xf32, #tpu.memory_space<vmem>>, vector<1x128xf32>
    %40 = vector.shape_cast %39 : vector<1x128xf32> to vector<1x1x128xf32>
    %41 = vector.broadcast %40 : vector<1x1x128xf32> to vector<2x8x128xf32>
    %42 = arith.addf %38, %41 : vector<2x8x128xf32>
    %43 = vector.extract_strided_slice %42 {offsets = [0, 0, 0], sizes = [2, 8, 32], strides = [1, 1, 1]} : vector<2x8x128xf32> to vector<2x8x32xf32>
    %cst_7 = arith.constant 0.000000e+00 : f32
    %44 = vector.broadcast %cst_7 : f32 to vector<2x8x32xf32>
    %45 = arith.maximumf %43, %44 : vector<2x8x32xf32>
    %46 = vector.extract_strided_slice %42 {offsets = [0, 0, 32], sizes = [2, 8, 32], strides = [1, 1, 1]} : vector<2x8x128xf32> to vector<2x8x32xf32>
    %cst_8 = arith.constant 0.000000e+00 : f32
    %47 = vector.broadcast %cst_8 : f32 to vector<2x8x32xf32>
    %48 = arith.maximumf %46, %47 : vector<2x8x32xf32>
    %49 = vector.extract_strided_slice %42 {offsets = [0, 0, 64], sizes = [2, 8, 64], strides = [1, 1, 1]} : vector<2x8x128xf32> to vector<2x8x64xf32>
    %cst_9 = arith.constant 0.000000e+00 : f32
    %50 = vector.broadcast %cst_9 : f32 to vector<2x1x32xf32>
    %51 = vector.extract_strided_slice %48 {offsets = [0, 0, 0], sizes = [2, 7, 32], strides = [1, 1, 1]} : vector<2x8x32xf32> to vector<2x7x32xf32>
    %52 = tpu.concatenate %50, %51 in 1 : vector<2x1x32xf32>, vector<2x7x32xf32> -> vector<2x8x32xf32>
    %53 = arith.truncf %52 : vector<2x8x32xf32> to vector<2x8x32xbf16>
    %54 = arith.truncf %45 : vector<2x8x32xf32> to vector<2x8x32xbf16>
    %55 = arith.truncf %48 : vector<2x8x32xf32> to vector<2x8x32xbf16>
    %cst_10 = arith.constant 0.000000e+00 : f32
    %56 = vector.broadcast %cst_10 : f32 to vector<2x1x32xf32>
    %57 = vector.extract_strided_slice %45 {offsets = [0, 1, 0], sizes = [2, 7, 32], strides = [1, 1, 1]} : vector<2x8x32xf32> to vector<2x7x32xf32>
    %58 = tpu.concatenate %57, %56 in 1 : vector<2x7x32xf32>, vector<2x1x32xf32> -> vector<2x8x32xf32>
    %59 = arith.truncf %58 : vector<2x8x32xf32> to vector<2x8x32xbf16>
    %60 = tpu.concatenate %53, %54, %55, %59 in 2 : vector<2x8x32xbf16>, vector<2x8x32xbf16>, vector<2x8x32xbf16>, vector<2x8x32xbf16> -> vector<2x8x128xbf16>
    %61 = vector.shape_cast %60 : vector<2x8x128xbf16> to vector<16x128xbf16>
    %c0_11 = arith.constant 0 : index
    %c0_12 = arith.constant 0 : index
    %62 = vector.load %arg5[%c0_11, %c0_12] : memref<128x64xbf16, #tpu.memory_space<vmem>>, vector<128x64xbf16>
    %cst_13 = arith.constant dense<0.000000e+00> : vector<16x64xf32>
    %63 = tpu.matmul %61, %62, %cst_13 {dimension_numbers = #tpu.dot_dimension_numbers<[1], [0], [0], [1], [0, 0, 1, 1], [], []>} : vector<16x128xbf16>, vector<128x64xbf16>, vector<16x64xf32> -> vector<16x64xf32>
    %c0_14 = arith.constant 0 : index
    %c0_15 = arith.constant 0 : index
    %64 = vector.load %arg6[%c0_14, %c0_15] : memref<1x64xf32, #tpu.memory_space<vmem>>, vector<1x64xf32>
    %65 = vector.broadcast %64 : vector<1x64xf32> to vector<16x64xf32>
    %66 = arith.addf %63, %65 : vector<16x64xf32>
    %67 = vector.shape_cast %49 : vector<2x8x64xf32> to vector<16x64xf32>
    %68 = arith.addf %66, %67 : vector<16x64xf32>
    %cst_16 = arith.constant 0.000000e+00 : f32
    %69 = vector.broadcast %cst_16 : f32 to vector<16x64xf32>
    %70 = arith.maximumf %68, %69 : vector<16x64xf32>
    %71 = vector.shape_cast %70 : vector<16x64xf32> to vector<2x8x64xf32>
    %72 = vector.extract_strided_slice %71 {offsets = [0, 0, 0], sizes = [2, 8, 32], strides = [1, 1, 1]} : vector<2x8x64xf32> to vector<2x8x32xf32>
    %73 = vector.extract_strided_slice %71 {offsets = [0, 0, 32], sizes = [2, 8, 32], strides = [1, 1, 1]} : vector<2x8x64xf32> to vector<2x8x32xf32>
    %cst_17 = arith.constant 0.000000e+00 : f32
    %74 = vector.broadcast %cst_17 : f32 to vector<2x1x32xf32>
    %75 = vector.extract_strided_slice %73 {offsets = [0, 0, 0], sizes = [2, 7, 32], strides = [1, 1, 1]} : vector<2x8x32xf32> to vector<2x7x32xf32>
    %76 = tpu.concatenate %74, %75 in 1 : vector<2x1x32xf32>, vector<2x7x32xf32> -> vector<2x8x32xf32>
    %77 = arith.truncf %76 : vector<2x8x32xf32> to vector<2x8x32xbf16>
    %78 = arith.truncf %72 : vector<2x8x32xf32> to vector<2x8x32xbf16>
    %79 = arith.truncf %73 : vector<2x8x32xf32> to vector<2x8x32xbf16>
    %80 = tpu.concatenate %77, %78, %79 in 2 : vector<2x8x32xbf16>, vector<2x8x32xbf16>, vector<2x8x32xbf16> -> vector<2x8x96xbf16>
    %81 = vector.shape_cast %80 : vector<2x8x96xbf16> to vector<16x96xbf16>
    %c0_18 = arith.constant 0 : index
    %c0_19 = arith.constant 0 : index
    %82 = vector.load %arg7[%c0_18, %c0_19] : memref<96x128xbf16, #tpu.memory_space<vmem>>, vector<96x128xbf16>
    %cst_20 = arith.constant dense<0.000000e+00> : vector<16x128xf32>
    %83 = tpu.matmul %81, %82, %cst_20 {dimension_numbers = #tpu.dot_dimension_numbers<[1], [0], [0], [1], [0, 0, 1, 1], [], []>} : vector<16x96xbf16>, vector<96x128xbf16>, vector<16x128xf32> -> vector<16x128xf32>
    %c0_21 = arith.constant 0 : index
    %c0_22 = arith.constant 0 : index
    %84 = vector.load %arg8[%c0_21, %c0_22] : memref<1x128xf32, #tpu.memory_space<vmem>>, vector<1x128xf32>
    %85 = vector.broadcast %84 : vector<1x128xf32> to vector<16x128xf32>
    %86 = arith.addf %83, %85 : vector<16x128xf32>
    %87 = vector.shape_cast %86 : vector<16x128xf32> to vector<2x8x128xf32>
    %88 = vector.extract_strided_slice %87 {offsets = [0, 0, 0], sizes = [2, 8, 64], strides = [1, 1, 1]} : vector<2x8x128xf32> to vector<2x8x64xf32>
    %cst_23 = arith.constant 0.000000e+00 : f32
    %89 = vector.broadcast %cst_23 : f32 to vector<2x8x64xf32>
    %90 = arith.maximumf %88, %89 : vector<2x8x64xf32>
    %91 = vector.extract_strided_slice %87 {offsets = [0, 0, 64], sizes = [2, 8, 64], strides = [1, 1, 1]} : vector<2x8x128xf32> to vector<2x8x64xf32>
    %cst_24 = arith.constant 0.000000e+00 : f32
    %92 = vector.broadcast %cst_24 : f32 to vector<2x1x64xf32>
    %93 = vector.extract_strided_slice %90 {offsets = [0, 0, 0], sizes = [2, 7, 64], strides = [1, 1, 1]} : vector<2x8x64xf32> to vector<2x7x64xf32>
    %94 = tpu.concatenate %92, %93 in 1 : vector<2x1x64xf32>, vector<2x7x64xf32> -> vector<2x8x64xf32>
    %95 = arith.truncf %94 : vector<2x8x64xf32> to vector<2x8x64xbf16>
    %96 = arith.truncf %90 : vector<2x8x64xf32> to vector<2x8x64xbf16>
    %cst_25 = arith.constant 0.000000e+00 : f32
    %97 = vector.broadcast %cst_25 : f32 to vector<2x1x64xf32>
    %98 = vector.extract_strided_slice %90 {offsets = [0, 1, 0], sizes = [2, 7, 64], strides = [1, 1, 1]} : vector<2x8x64xf32> to vector<2x7x64xf32>
    %99 = tpu.concatenate %98, %97 in 1 : vector<2x7x64xf32>, vector<2x1x64xf32> -> vector<2x8x64xf32>
    %100 = arith.truncf %99 : vector<2x8x64xf32> to vector<2x8x64xbf16>
    %101 = tpu.concatenate %95, %96, %100 in 2 : vector<2x8x64xbf16>, vector<2x8x64xbf16>, vector<2x8x64xbf16> -> vector<2x8x192xbf16>
    %102 = vector.shape_cast %101 : vector<2x8x192xbf16> to vector<16x192xbf16>
    %c0_26 = arith.constant 0 : index
    %c0_27 = arith.constant 0 : index
    %103 = vector.load %arg9[%c0_26, %c0_27] : memref<192x64xbf16, #tpu.memory_space<vmem>>, vector<192x64xbf16>
    %cst_28 = arith.constant dense<0.000000e+00> : vector<16x64xf32>
    %104 = tpu.matmul %102, %103, %cst_28 {dimension_numbers = #tpu.dot_dimension_numbers<[1], [0], [0], [1], [0, 0, 1, 1], [], []>} : vector<16x192xbf16>, vector<192x64xbf16>, vector<16x64xf32> -> vector<16x64xf32>
    %c0_29 = arith.constant 0 : index
    %c0_30 = arith.constant 0 : index
    %105 = vector.load %arg10[%c0_29, %c0_30] : memref<1x64xf32, #tpu.memory_space<vmem>>, vector<1x64xf32>
    %106 = vector.broadcast %105 : vector<1x64xf32> to vector<16x64xf32>
    %107 = arith.addf %104, %106 : vector<16x64xf32>
    %108 = vector.shape_cast %107 : vector<16x64xf32> to vector<2x8x64xf32>
    %109 = arith.addf %108, %91 : vector<2x8x64xf32>
    %cst_31 = arith.constant 0.000000e+00 : f32
    %110 = vector.broadcast %cst_31 : f32 to vector<2x8x64xf32>
    %111 = arith.maximumf %109, %110 : vector<2x8x64xf32>
    %112 = vector.extract_strided_slice %111 {offsets = [0, 0, 0], sizes = [2, 2, 64], strides = [1, 1, 1]} : vector<2x8x64xf32> to vector<2x2x64xf32>
    %cst_32 = arith.constant dense<0xFF800000> : vector<2x64xf32>
    %113 = vector.multi_reduction <maximumf>, %112, %cst_32 [1] : vector<2x2x64xf32> to vector<2x64xf32>
    %114 = vector.extract_strided_slice %111 {offsets = [0, 2, 0], sizes = [2, 2, 64], strides = [1, 1, 1]} : vector<2x8x64xf32> to vector<2x2x64xf32>
    %cst_33 = arith.constant dense<0xFF800000> : vector<2x64xf32>
    %115 = vector.multi_reduction <maximumf>, %114, %cst_33 [1] : vector<2x2x64xf32> to vector<2x64xf32>
    %116 = vector.extract_strided_slice %111 {offsets = [0, 4, 0], sizes = [2, 2, 64], strides = [1, 1, 1]} : vector<2x8x64xf32> to vector<2x2x64xf32>
    %cst_34 = arith.constant dense<0xFF800000> : vector<2x64xf32>
    %117 = vector.multi_reduction <maximumf>, %116, %cst_34 [1] : vector<2x2x64xf32> to vector<2x64xf32>
    %118 = vector.extract_strided_slice %111 {offsets = [0, 6, 0], sizes = [2, 2, 64], strides = [1, 1, 1]} : vector<2x8x64xf32> to vector<2x2x64xf32>
    %cst_35 = arith.constant dense<0xFF800000> : vector<2x64xf32>
    %119 = vector.multi_reduction <maximumf>, %118, %cst_35 [1] : vector<2x2x64xf32> to vector<2x64xf32>
    %120 = tpu.concatenate %113, %115, %117, %119 in 1 : vector<2x64xf32>, vector<2x64xf32>, vector<2x64xf32>, vector<2x64xf32> -> vector<2x256xf32>
    %121 = arith.truncf %120 : vector<2x256xf32> to vector<2x256xbf16>
    %c0_36 = arith.constant 0 : index
    %c0_37 = arith.constant 0 : index
    %122 = vector.load %arg11[%c0_36, %c0_37] : memref<256x64xbf16, #tpu.memory_space<vmem>>, vector<256x64xbf16>
    %cst_38 = arith.constant dense<0.000000e+00> : vector<2x64xf32>
    %123 = tpu.matmul %121, %122, %cst_38 {dimension_numbers = #tpu.dot_dimension_numbers<[1], [0], [0], [1], [0, 0, 1, 1], [], []>} : vector<2x256xbf16>, vector<256x64xbf16>, vector<2x64xf32> -> vector<2x64xf32>
    %c0_39 = arith.constant 0 : index
    %c0_40 = arith.constant 0 : index
    %124 = vector.load %arg12[%c0_39, %c0_40] : memref<1x64xf32, #tpu.memory_space<vmem>>, vector<1x64xf32>
    %125 = vector.broadcast %124 : vector<1x64xf32> to vector<2x64xf32>
    %126 = arith.addf %123, %125 : vector<2x64xf32>
    %cst_41 = arith.constant 0.000000e+00 : f32
    %127 = vector.broadcast %cst_41 : f32 to vector<2x64xf32>
    %128 = arith.maximumf %126, %127 : vector<2x64xf32>
    %129 = arith.truncf %128 : vector<2x64xf32> to vector<2x64xbf16>
    %c0_42 = arith.constant 0 : index
    %c0_43 = arith.constant 0 : index
    %130 = vector.load %arg13[%c0_42, %c0_43] : memref<64x8xbf16, #tpu.memory_space<vmem>>, vector<64x8xbf16>
    %cst_44 = arith.constant dense<0.000000e+00> : vector<2x8xf32>
    %131 = tpu.matmul %129, %130, %cst_44 {dimension_numbers = #tpu.dot_dimension_numbers<[1], [0], [0], [1], [0, 0, 1, 1], [], []>} : vector<2x64xbf16>, vector<64x8xbf16>, vector<2x8xf32> -> vector<2x8xf32>
    %c0_45 = arith.constant 0 : index
    %c0_46 = arith.constant 0 : index
    %132 = vector.load %arg14[%c0_45, %c0_46] : memref<1x8xf32, #tpu.memory_space<vmem>>, vector<1x8xf32>
    %133 = vector.broadcast %132 : vector<1x8xf32> to vector<2x8xf32>
    %134 = arith.addf %131, %133 : vector<2x8xf32>
    %c0_47 = arith.constant 0 : index
    %c0_48 = arith.constant 0 : index
    %135 = vector.load %arg15[%c0_47, %c0_48] : memref<2x8xf32, #tpu.memory_space<vmem>>, vector<2x8xf32>
    tpu.vector_store %arg15[%c0_47, %c0_48], %134 {strides = array<i32>} : memref<2x8xf32, #tpu.memory_space<vmem>>, vector<2x8xf32>,
    return
  }
  func.func @transform_0(%arg0: i32) -> (i32, i32) {
    %c0_i32 = arith.constant 0 : i32
    %c0_i32_0 = arith.constant 0 : i32
    return %arg0, %c0_i32 : i32, i32
  }
  func.func @transform_1(%arg0: i32) -> (i32, i32) {
    %c0_i32 = arith.constant 0 : i32
    %c0_i32_0 = arith.constant 0 : i32
    return %arg0, %c0_i32 : i32, i32
  }
  func.func @transform_2(%arg0: i32) -> (i32, i32) {
    %c0_i32 = arith.constant 0 : i32
    %c0_i32_0 = arith.constant 0 : i32
    %c0_i32_1 = arith.constant 0 : i32
    return %c0_i32, %c0_i32_0 : i32, i32
  }
  func.func @transform_3(%arg0: i32) -> (i32, i32) {
    %c0_i32 = arith.constant 0 : i32
    %c0_i32_0 = arith.constant 0 : i32
    %c0_i32_1 = arith.constant 0 : i32
    return %c0_i32, %c0_i32_0 : i32, i32
  }
  func.func @transform_4(%arg0: i32) -> (i32, i32) {
    %c0_i32 = arith.constant 0 : i32
    %c0_i32_0 = arith.constant 0 : i32
    %c0_i32_1 = arith.constant 0 : i32
    return %c0_i32, %c0_i32_0 : i32, i32
  }
  func.func @transform_5(%arg0: i32) -> (i32, i32) {
    %c0_i32 = arith.constant 0 : i32
    %c0_i32_0 = arith.constant 0 : i32
    %c0_i32_1 = arith.constant 0 : i32
    return %c0_i32, %c0_i32_0 : i32, i32
  }
  func.func @transform_6(%arg0: i32) -> (i32, i32) {
    %c0_i32 = arith.constant 0 : i32
    %c0_i32_0 = arith.constant 0 : i32
    %c0_i32_1 = arith.constant 0 : i32
    return %c0_i32, %c0_i32_0 : i32, i32
  }
  func.func @transform_7(%arg0: i32) -> (i32, i32) {
    %c0_i32 = arith.constant 0 : i32
    %c0_i32_0 = arith.constant 0 : i32
    %c0_i32_1 = arith.constant 0 : i32
    return %c0_i32, %c0_i32_0 : i32, i32
  }
  func.func @transform_8(%arg0: i32) -> (i32, i32) {
    %c0_i32 = arith.constant 0 : i32
    %c0_i32_0 = arith.constant 0 : i32
    %c0_i32_1 = arith.constant 0 : i32
    return %c0_i32, %c0_i32_0 : i32, i32
  }
  func.func @transform_9(%arg0: i32) -> (i32, i32) {
    %c0_i32 = arith.constant 0 : i32
    %c0_i32_0 = arith.constant 0 : i32
    %c0_i32_1 = arith.constant 0 : i32
    return %c0_i32, %c0_i32_0 : i32, i32
  }
  func.func @transform_10(%arg0: i32) -> (i32, i32) {
    %c0_i32 = arith.constant 0 : i32
    %c0_i32_0 = arith.constant 0 : i32
    %c0_i32_1 = arith.constant 0 : i32
    return %c0_i32, %c0_i32_0 : i32, i32
  }
  func.func @transform_11(%arg0: i32) -> (i32, i32) {
    %c0_i32 = arith.constant 0 : i32
    %c0_i32_0 = arith.constant 0 : i32
    %c0_i32_1 = arith.constant 0 : i32
    return %c0_i32, %c0_i32_0 : i32, i32
  }
  func.func @transform_12(%arg0: i32) -> (i32, i32) {
    %c0_i32 = arith.constant 0 : i32
    %c0_i32_0 = arith.constant 0 : i32
    %c0_i32_1 = arith.constant 0 : i32
    return %c0_i32, %c0_i32_0 : i32, i32
  }
  func.func @transform_13(%arg0: i32) -> (i32, i32) {
    %c0_i32 = arith.constant 0 : i32
    %c0_i32_0 = arith.constant 0 : i32
    %c0_i32_1 = arith.constant 0 : i32
    return %c0_i32, %c0_i32_0 : i32, i32
  }
  func.func @transform_14(%arg0: i32) -> (i32, i32) {
    %c0_i32 = arith.constant 0 : i32
    %c0_i32_0 = arith.constant 0 : i32
    return %arg0, %c0_i32 : i32, i32
  }
}

</mosaic_0001>

<bundles_post_ra>
// kernel: tpu_custom_call.1
= control target key start
LH: loop header
LB: loop body
LE: loop exit
PB: predicated region body
PF: predicated region fallthrough
CT: control target
= control target key end

     0   :  { %6 = vsyncpa [#allocation3], 0  ;;  %s127_s0 = inlined_call_operand.hbm [shape: f32[2,8,32], index: 0, kind: input, shape index: {}]   ;;  %s128_s1 = inlined_call_operand.hbm [shape: f32[2,8,32], index: 1, kind: output, shape index: {}]  }
   0x1   :  { %7 = vsyncpa [#allocation4], 0  ;;  %s12_s8 = sshll.u32 %s127_s0, 4  ;;  %s107_s9 = smov [#allocation2]   ;;  %s13_s8 = int_to_ptr.hbm [resolvable:$true] %s12_s8 }
   0x2   :  { %s14_s10 = sshll.u32 %s107_s9, 4  ;;  %s108_s11 = smov 128   ;;  %s15_s10 = int_to_ptr.vmem [resolvable:$true] %s14_s10 }
   0x3   :  { %s109_s12 = smov 8  }
   0x4   :  { %20 = dma.hbm_to_vmem [thread:$0]  %s13_s8, 256, %s15_s10, [#allocation3], %s108_s11, %s108_s11, %s109_s12  }
   0x5   :  { %103 = dma.done.wait [#allocation3], 256  }
   0x6   :  { %104 = vsyncadd [#allocation3], 4294967040  ;;  %s110_s13 = smov [#allocation5]   ;;  %s38_s17 = sshll.u32 %s128_s1, 4  ;;  %v25_v0 = vld [vmem:[#allocation2] sm:$0xff]  ;;  %vm29_vm0 = vcmask 261120   ;;  %s39_s17 = int_to_ptr.hbm [resolvable:$true] %s38_s17 }
   0x7   :  { %s36_s14 = sshll.u32 %s110_s13, 4  ;;  %v26_v1 = vld [vmem:[#allocation2 + $0x8] sm:$0xff]  ;;  %v27_v2 = vrot.slane %v25_v0, 7  ;;  %s37_s14 = int_to_ptr.vmem [resolvable:$true] %s36_s14 }
   0x8   :  { %v28_v3 = vrot.slane %v26_v1, 7 }
   0x9   :  { %30 = vst.msk [vmem:[#allocation5] sm:$0xff] %vm29_vm0, %v27_v2 }
   0xa   :  { %31 = vst.msk [vmem:[#allocation5 + $0x8] sm:$0xff] %vm29_vm0, %v28_v3 }
   0xb   :  { %44 = dma.vmem_to_hbm [thread:$0]  %s37_s14, 256, %s39_s17, [#allocation4], %s108_s11, %s108_s11, %s109_s12  }
   0xc   :  { %105 = dma.done.wait [#allocation4], 256  }
   0xd   :  { %106 = vsyncadd [#allocation4], 4294967040 }
   0xe   :  { %49 = vsyncpa [#allocation3], 1 }
   0xf   :  { %50 = vsyncpa [#allocation4], 1 }

// kernel: tpu_custom_call.1
= control target key start
LH: loop header
LB: loop body
LE: loop exit
PB: predicated region body
PF: predicated region fallthrough
CT: control target
= control target key end

     0   :  { %v65_v1 = vlaneseq  ;;  %s1206_s15 = smov 1   ;;  %s1506_s0 = inlined_call_operand.vmem [shape: f32[2,8], index: 0, kind: input, shape index: {}]   ;;  %s1507_s1 = inlined_call_operand.vmem [shape: f32[2,8], index: 1, kind: input, shape index: {}]   ;;  %s1508_s2 = inlined_call_operand.vmem [shape: f32[4,128], index: 2, kind: input, shape index: {}]   ;;  %s1509_s3 = inlined_call_operand.vmem [shape: f32[1,128], index: 3, kind: input, shape index: {}]   ;;  %s1510_s4 = inlined_call_operand.vmem [shape: bf16[128,64], index: 4, kind: input, shape index: {}]   ;;  %s1511_s5 = inlined_call_operand.vmem [shape: f32[1,64], index: 5, kind: input, shape index: {}]   ;;  %s1512_s6 = inlined_call_operand.vmem [shape: bf16[96,128], index: 6, kind: input, shape index: {}]   ;;  %s1513_s7 = inlined_call_operand.vmem [shape: f32[1,128], index: 7, kind: input, shape index: {}]   ;;  %s1514_s8 = inlined_call_operand.vmem [shape: bf16[192,64], index: 8, kind: input, shape index: {}]   ;;  %s1515_s9 = inlined_call_operand.vmem [shape: f32[1,64], index: 9, kind: input, shape index: {}]   ;;  %s1516_s10 = inlined_call_operand.vmem [shape: bf16[256,64], index: 10, kind: input, shape index: {}]   ;;  %s1517_s11 = inlined_call_operand.vmem [shape: f32[1,64], index: 11, kind: input, shape index: {}]   ;;  %s1518_s12 = inlined_call_operand.vmem [shape: bf16[64,8], index: 12, kind: input, shape index: {}]   ;;  %s1519_s13 = inlined_call_operand.vmem [shape: f32[1,8], index: 13, kind: input, shape index: {}]   ;;  %s1520_s14 = inlined_call_operand.hbm [shape: f32[2,8], index: 14, kind: output, shape index: {}]  }
   0x1   :  { %v50_v0 = vld [vmem:[%s1507_s1] sm:$0x3] }
   0x2   :  { %52 = vrot.lane.b32.xlu0 %v50_v0, %s1206_s15  ;;  %v66_v2 = vshrl.u32 %v65_v1, 7 }
   0x3   :  { %19 = vsyncpa [#allocation3], 0  ;;  %v49_v3 = vld [vmem:[%s1506_s0] sm:$0x3]  ;;  %v107_v4 = vperm.slane %v50_v0, 1  ;;  %s1207_s18 = smov 127  }
   0x4   :  { %1163 = vset.pattern.permute.xlu1 %v66_v2  ;;  %1161 = vset.pattern.permute.xlu2 %v66_v2  ;;  %v81_v5 = vperm.slane %v49_v3, 0  ;;  %v100_v6 = vperm.slane %v50_v0, 0  ;;  %v88_v7 = vperm.slane %v49_v3, 1  ;;  %vm55_vm0 = vcmask 7168   ;;  %v63_v19 = vld [vmem:[%s1508_s2] sm:$0xf] }
   0x5   :  { %1162 = vset.pattern.permute.xlu0 %v66_v2  ;;  %vm61_vm1 = vcmask 56320   ;;  %v95_v20 = vperm.slane %v63_v19, 1  ;;  %v78_v21 = vperm.slane %v63_v19, 0  ;;  %v114_v23 = vperm.slane %v63_v19, 2  ;;  %v1174_v32 = vld [vmem:[%s1509_s3] ss:$0 sm:$0xff] }
   0x6   :  { %v133_v26 = vperm.slane %v63_v19, 3  ;;  %s1208_s2 = smov 32   ;;  %vm167_vm2 = vcmask 1046528   ;;  %s1209_s3 = smov 96   ;;  %vm156_vm3 = vcmask 1040384   ;;  %vm192_vm4 = vcmask 261120  }
   0x7   :  { %s1210_s21 = smov 64   ;;  %vm199_vm5 = vcmask 523264   ;;  %vm202_vm6 = vcmask 785408   ;;  %vm607_vm7 = vcmask 517120   ;;  %vm637_vm8 = vcmask 521220   ;;  %s1211_s28 = smov [#allocation2]  }
   0x8   :  { %vm652_vm9 = vcmask 523270   ;;  %vm622_vm10 = vcmask 519170   ;;  %vm669_vm11 = vcmask 1041409   ;;  %vm904_vm12 = vcmask 58368  }
   0xa   :  { %58 = vrot.lane.b32.xlu0 %v49_v3, %s1207_s18  ;;  %v1116_v3 = vld [vmem:[%s1510_s4 + $0x38] sm:$0xff] }
   0xb   :  { %281 = vmatpush.bf16.msra.mxu0 %v1116_v3 }
   0xc   :  { %112 = vperm.xlu1 %1163, %v107_v4   ;;  %86 = vperm.xlu2 %1161, %v81_v5   ;;  %v1115_v4 = vld [vmem:[%s1510_s4 + $0x30] sm:$0xff]  ;;  %v1114_v5 = vld [vmem:[%s1510_s4 + $0x28] sm:$0xff] }
   0xf   :  { %282 = vmatpush.bf16.msra.mxu0 %v1115_v4 }
  0x12   :  { %105 = vperm.xlu0 %1162, %v100_v6   ;;  %v1113_v6 = vld [vmem:[%s1510_s4 + $0x20] sm:$0xff] }
  0x13   :  { %283 = vmatpush.bf16.msra.mxu0 %v1114_v5 }
  0x14   :  { %93 = vperm.xlu2 %1161, %v88_v7   ;;  %v1112_v7 = vld [vmem:[%s1510_s4 + $0x18] sm:$0xff] }
  0x17   :  { %284 = vmatpush.bf16.msra.mxu0 %v1113_v6 }
  0x1b   :  { %285 = vmatpush.bf16.msra.mxu0 %v1112_v7 }
  0x66   :  { %v87_v16 = vpop.permute.xlu2 %86 }
  0x67   :  { %v96_v25 = vmul.f32 %v95_v20, %v87_v16 }
  0x6e   :  { %v94_v18 = vpop.permute.xlu2 %93 }
  0x6f   :  { %v97_v38 = vmul.f32 %v95_v20, %v94_v18 }
  0x74   :  { %v53_v8 = vpop.permute.xlu0 %52 }
  0x75   :  { %v56_v9 = vsel %vm55_vm0, 0.0, %v53_v8  ;;  %v1111_v8 = vld [vmem:[%s1510_s4 + $0x10] sm:$0xff] }
  0x76   :  { %v64_v10 = vperm.slane %v56_v9, 0  ;;  %v71_v13 = vperm.slane %v56_v9, 1  ;;  %286 = vmatpush.bf16.msra.mxu0 %v1111_v8  ;;  %v1110_v9 = vld [vmem:[%s1510_s4 + $0x8] sm:$0xff] }
  0x78   :  { %69 = vperm.xlu1 %1163, %v64_v10   ;;  %v1109_v10 = vld [vmem:[%s1510_s4] sm:$0xff] }
  0x7a   :  { %287 = vmatpush.bf16.msra.mxu0 %v1110_v9  ;;  %v1134_v9 = vld [vmem:[%s1514_s8 + $0x58] sm:$0xff] }
  0x7b   :  { %585 = vmatpush.bf16.msra.mxu3 %v1134_v9 }
  0x7c   :  { %v59_v11 = vpop.permute.xlu0 %58 }
  0x7d   :  { %v62_v12 = vsel %vm61_vm1, %v59_v11, 0.0 }
  0x7e   :  { %v119_v14 = vperm.slane %v62_v12, 0  ;;  %v126_v15 = vperm.slane %v62_v12, 1  ;;  %v113_v17 = vpop.permute.xlu1 %112  ;;  %288 = vmatpush.bf16.msra.mxu0 %v1109_v10  ;;  %v1133_v10 = vld [vmem:[%s1514_s8 + $0x50] sm:$0xff] }
  0x7f   :  { %v116_v42 = vmul.f32 %v114_v23, %v113_v17  ;;  %586 = vmatpush.bf16.msra.mxu3 %v1133_v10 }
  0x80   :  { %76 = vperm.xlu1 %1163, %v71_v13   ;;  %124 = vperm.xlu2 %1161, %v119_v14  }
  0x84   :  { %v106_v22 = vpop.permute.xlu0 %105 }
  0x85   :  { %v115_v28 = vmul.f32 %v114_v23, %v106_v22 }
  0x88   :  { %131 = vperm.xlu1 %1163, %v126_v15  }
  0xda   :  { %v125_v29 = vpop.permute.xlu2 %124 }
  0xdb   :  { %v134_v31 = vmul.f32 %v133_v26, %v125_v29 }
  0xea   :  { %v70_v24 = vpop.permute.xlu1 %69 }
  0xeb   :  { %v79_v27 = vmul.f32 %v78_v21, %v70_v24 }
  0xed   :  { %v98_v30 = vadd.f32 %v96_v25, %v79_v27 }
  0xef   :  { %v117_v33 = vadd.f32 %v115_v28, %v98_v30 }
  0xf1   :  { %v136_v34 = vadd.f32 %v134_v31, %v117_v33  ;;  %v1175_v31 = vld [vmem:[%s1511_s5] ss:$0 sm:$0xff] }
  0xf2   :  { %v77_v35 = vpop.permute.xlu1 %76 }
  0xf3   :  { %v142_v36 = vadd.f32 %v1174_v32, %v136_v34  ;;  %v80_v37 = vmul.f32 %v78_v21, %v77_v35 }
  0xf5   :  { %v144_v39 = vmax.f32 %v142_v36, 0.0  ;;  %v99_v40 = vadd.f32 %v97_v38, %v80_v37 }
  0xf7   :  { %v161_v41 = vpack.c.bf16 %v144_v39, %v144_v39  ;;  %v118_v45 = vadd.f32 %v116_v42, %v99_v40  ;;  %v163_v49 = vrot.slane %v144_v39, 1  ;;  %v148_v53 = vrot.slane %v144_v39, 7 }
  0xf9   :  { %v174_v43 = vunpack.c.l.b16 %v161_v41  ;;  %v168_v52 = vsel %vm167_vm2, %v163_v49, 0.0 }
  0xfa   :  { %v132_v44 = vpop.permute.xlu1 %131  ;;  %v170_v60 = vpack.c.bf16 %v168_v52, %v168_v52  ;;  %v1121_v52 = vld [vmem:[%s1512_s6 + $0x20] sm:$0xff] }
  0xfb   :  { %v135_v46 = vmul.f32 %v133_v26, %v132_v44  ;;  %v176_v47 = vpack.c.b16 %v174_v43, %v174_v43 }
  0xfc   :  { %v184_v0 = vunpack.c.l.b16 %v170_v60 }
  0xfd   :  { %v137_v48 = vadd.f32 %v135_v46, %v118_v45  ;;  %178 = vrot.lane.b32.xlu0 %v176_v47, %s1208_s2 }
  0xfe   :  { %v186_v2 = vpack.c.b16 %v184_v0, %v184_v0 }
  0xff   :  { %v143_v50 = vadd.f32 %v1174_v32, %v137_v48 }
 0x101   :  { %v145_v51 = vmax.f32 %v143_v50, 0.0 }
 0x103   :  { %v149_v54 = vrot.slane %v145_v51, 7  ;;  %v162_v55 = vpack.c.bf16 %v145_v51, %v145_v51  ;;  %v164_v56 = vrot.slane %v145_v51, 1  ;;  %v1122_v51 = vld [vmem:[%s1512_s6 + $0x28] sm:$0xff] }
 0x104   :  { %403 = vmatpush.bf16.msra.mxu1 %v1122_v51 }
 0x105   :  { %v1164_v57 = vpack.i.bf16 %v149_v54, %v148_v53  ;;  %v175_v58 = vunpack.c.l.b16 %v162_v55  ;;  %v169_v59 = vsel %vm167_vm2, %v164_v56, 0.0  ;;  %v1120_v53 = vld [vmem:[%s1512_s6 + $0x18] sm:$0xff]  ;;  %v1119_v54 = vld [vmem:[%s1512_s6 + $0x10] sm:$0xff]  ;;  %v1118_v55 = vld [vmem:[%s1512_s6 + $0x8] sm:$0xff] }
 0x106   :  { %v171_v61 = vpack.c.bf16 %v169_v59, %v169_v59  ;;  %v1117_v56 = vld [vmem:[%s1512_s6] sm:$0xff]  ;;  %s913_s6 = sshll.u32 %s1520_s14, 4  ;;  %s914_s6 = int_to_ptr.hbm [resolvable:$true] %s913_s6 }
 0x107   :  { %1165 = vrot.lane.b32.xlu2 %v1164_v57, %s1209_s3  ;;  %v177_v62 = vpack.c.b16 %v175_v58, %v175_v58 }
 0x108   :  { %v185_v63 = vunpack.c.l.b16 %v171_v61  ;;  %404 = vmatpush.bf16.msra.mxu1 %v1121_v52 }
 0x109   :  { %180 = vrot.lane.b32.xlu1 %v177_v62, %s1208_s2 }
 0x10a   :  { %v187_v1 = vpack.c.b16 %v185_v63, %v185_v63 }
 0x10c   :  { %190 = vrot.lane.b32.xlu0 %v187_v1, %s1209_s3  ;;  %405 = vmatpush.bf16.msra.mxu1 %v1120_v53 }
 0x10f   :  { %188 = vrot.lane.b32.xlu2 %v186_v2, %s1209_s3 }
 0x110   :  { %406 = vmatpush.bf16.msra.mxu1 %v1119_v54 }
 0x111   :  { %297 = vrot.lane.b32.xlu1 %v142_v36, %s1210_s21 }
 0x114   :  { %407 = vmatpush.bf16.msra.mxu1 %v1118_v55 }
 0x117   :  { %299 = vrot.lane.b32.xlu2 %v143_v50, %s1210_s21 }
 0x118   :  { %408 = vmatpush.bf16.msra.mxu1 %v1117_v56  ;;  %v1177_v56 = vld [vmem:[%s1515_s9] ss:$0 sm:$0xff] }
 0x161   :  { %v1166_v11 = vpop.permute.xlu2 %1165 }
 0x162   :  { %v1167_v12 = vunpack.i.l.bf16 %v1166_v11  ;;  %v1168_v14 = vunpack.i.h.bf16 %v1166_v11  ;;  %v1132_v11 = vld [vmem:[%s1514_s8 + $0x48] sm:$0xff] }
 0x163   :  { %587 = vmatpush.bf16.msra.mxu3 %v1132_v11 }
 0x164   :  { %v157_v13 = vsel %vm156_vm3, 0.0, %v1167_v12  ;;  %v158_v17 = vsel %vm156_vm3, 0.0, %v1168_v14  ;;  %v1131_v12 = vld [vmem:[%s1514_s8 + $0x40] sm:$0xff] }
 0x165   :  { %v159_v16 = vpack.c.bf16 %v157_v13, %v157_v13  ;;  %v160_v19 = vpack.c.bf16 %v158_v17, %v158_v17  ;;  %v1176_v13 = vld [vmem:[%s1513_s7] ss:$0 sm:$0xff] }
 0x167   :  { %588 = vmatpush.bf16.msra.mxu3 %v1131_v12 }
 0x169   :  { %v189_v22 = vpop.permute.xlu2 %188 }
 0x16f   :  { %v179_v15 = vpop.permute.xlu0 %178 }
 0x170   :  { %v195_v18 = vsel %vm192_vm4, %v159_v16, %v179_v15 }
 0x171   :  { %v200_v20 = vsel %vm199_vm5, %v195_v18, %v179_v15  ;;  %v300_v41 = vpop.permute.xlu2 %299 }
 0x172   :  { %v204_v25 = vsel %vm202_vm6, %v200_v20, %v189_v22 }
 0x173   :  { %v229_v29 = vunpack.c.l.b16 %v204_v25 }
 0x17b   :  { %v181_v21 = vpop.permute.xlu1 %180 }
 0x17c   :  { %v198_v23 = vsel %vm192_vm4, %v160_v19, %v181_v21 }
 0x17d   :  { %v201_v24 = vsel %vm199_vm5, %v198_v23, %v181_v21 }
 0x17e   :  { %v191_v26 = vpop.permute.xlu0 %190 }
 0x17f   :  { %v206_v27 = vsel %vm202_vm6, %v201_v24, %v191_v26 }
 0x180   :  { %v230_v28 = vunpack.c.l.b16 %v206_v27 }
 0x182   :  { %v231_v30 = vpack.c.b16 %v230_v28, %v229_v29 }
 0x183   :  { %v298_v34 = vpop.permute.xlu1 %297 }
 0x184   :  { %289 = vmatmul.bf16.vlgmr.msra.gmra.mxu0 %v231_v30 }
 0x201   :  { %v290_v32 = vpop.f32.mrf.mxu0 }
 0x202   :  { %v291_v33 = vadd.f32 %v1175_v31, %v290_v32 }
 0x204   :  { %v303_v35 = vadd.f32 %v298_v34, %v291_v33 }
 0x206   :  { %v305_v36 = vmax.f32 %v303_v35, 0.0  ;;  %v1130_v35 = vld [vmem:[%s1514_s8 + $0x38] sm:$0xff] }
 0x207   :  { %567 = vmatpush.bf16.msra.mxu2 %v1130_v35 }
 0x208   :  { %v321_v37 = vpack.c.bf16 %v305_v36, %v305_v36  ;;  %v309_v45 = vrot.slane %v305_v36, 7  ;;  %v1129_v36 = vld [vmem:[%s1514_s8 + $0x30] sm:$0xff] }
 0x209   :  { %v292_v38 = vpop.f32.mrf.mxu0 }
 0x20a   :  { %v293_v39 = vadd.f32 %v1175_v31, %v292_v38  ;;  %v325_v40 = vunpack.c.l.b16 %v321_v37  ;;  %v1128_v37 = vld [vmem:[%s1514_s8 + $0x28] sm:$0xff]  ;;  %v1127_v38 = vld [vmem:[%s1514_s8 + $0x20] sm:$0xff] }
 0x20b   :  { %568 = vmatpush.bf16.msra.mxu2 %v1129_v36 }
 0x20c   :  { %v304_v42 = vadd.f32 %v300_v41, %v293_v39  ;;  %v327_v43 = vpack.c.b16 %v325_v40, %v325_v40  ;;  %v1126_v39 = vld [vmem:[%s1514_s8 + $0x18] sm:$0xff]  ;;  %v1125_v40 = vld [vmem:[%s1514_s8 + $0x10] sm:$0xff]  ;;  %v1124_v41 = vld [vmem:[%s1514_s8 + $0x8] sm:$0xff] }
 0x20e   :  { %v306_v44 = vmax.f32 %v304_v42, 0.0  ;;  %329 = vrot.lane.b32.xlu1 %v327_v43, %s1208_s2  ;;  %v1123_v42 = vld [vmem:[%s1514_s8] sm:$0xff] }
 0x20f   :  { %569 = vmatpush.bf16.msra.mxu2 %v1128_v37  ;;  %v1145_v37 = vld [vmem:[%s1516_s10 + $0x50] sm:$0xff] }
 0x210   :  { %v310_v46 = vrot.slane %v306_v44, 7  ;;  %v322_v47 = vpack.c.bf16 %v306_v44, %v306_v44 }
 0x212   :  { %v1169_v48 = vpack.i.bf16 %v310_v46, %v309_v45  ;;  %v326_v49 = vunpack.c.l.b16 %v322_v47 }
 0x213   :  { %570 = vmatpush.bf16.msra.mxu2 %v1127_v38 }
 0x214   :  { %1170 = vrot.lane.b32.xlu0 %v1169_v48, %s1209_s3  ;;  %v328_v50 = vpack.c.b16 %v326_v49, %v326_v49 }
 0x216   :  { %331 = vrot.lane.b32.xlu2 %v328_v50, %s1208_s2 }
 0x217   :  { %571 = vmatpush.bf16.msra.mxu2 %v1126_v39 }
 0x21b   :  { %572 = vmatpush.bf16.msra.mxu2 %v1125_v40 }
 0x21f   :  { %573 = vmatpush.bf16.msra.mxu2 %v1124_v41 }
 0x223   :  { %574 = vmatpush.bf16.msra.mxu2 %v1123_v42 }
 0x270   :  { %v332_v0 = vpop.permute.xlu2 %331 }
 0x280   :  { %v330_v1 = vpop.permute.xlu1 %329 }
 0x286   :  { %v1171_v57 = vpop.permute.xlu0 %1170 }
 0x287   :  { %v1173_v58 = vunpack.i.h.bf16 %v1171_v57  ;;  %v1172_v59 = vunpack.i.l.bf16 %v1171_v57 }
 0x289   :  { %v318_v60 = vsel %vm156_vm3, 0.0, %v1173_v58  ;;  %v317_v61 = vsel %vm156_vm3, 0.0, %v1172_v59 }
 0x28a   :  { %v320_v62 = vpack.c.bf16 %v318_v60, %v318_v60  ;;  %v319_v63 = vpack.c.bf16 %v317_v61, %v317_v61  ;;  %v1150_v60 = vld [vmem:[%s1516_s10 + $0x78] sm:$0xff] }
 0x28b   :  { %837 = vmatpush.bf16.msrb.mxu1 %v1150_v60 }
 0x28c   :  { %v335_v2 = vsel %vm192_vm4, %v319_v63, %v330_v1  ;;  %v338_v3 = vsel %vm192_vm4, %v320_v62, %v332_v0  ;;  %v1149_v62 = vld [vmem:[%s1516_s10 + $0x70] sm:$0xff]  ;;  %v1142_v63 = vld [vmem:[%s1516_s10 + $0x38] sm:$0xff] }
 0x28d   :  { %v339_v4 = vsel %vm199_vm5, %v335_v2, %v330_v1  ;;  %v340_v5 = vsel %vm199_vm5, %v338_v3, %v332_v0  ;;  %824 = vmatpush.bf16.msrb.mxu3 %v1142_v63  ;;  %v1148_v3 = vld [vmem:[%s1516_s10 + $0x68] sm:$0xff] }
 0x28e   :  { %v359_v6 = vunpack.c.l.b16 %v339_v4  ;;  %v360_v7 = vunpack.c.l.b16 %v340_v5 }
 0x28f   :  { %838 = vmatpush.bf16.msrb.mxu1 %v1149_v62 }
 0x290   :  { %v361_v8 = vpack.c.b16 %v360_v7, %v359_v6 }
 0x292   :  { %978 = vmatmul.msk.bf16.vlgmr.msra.gmra.mxu1 %vm202_vm6, %v361_v8 }
 0x293   :  { %839 = vmatpush.bf16.msrb.mxu1 %v1148_v3 }
 0x30f   :  { %v410_v14 = vpop.f32.mrf.mxu1 }
 0x310   :  { %v411_v15 = vadd.f32 %v1176_v13, %v410_v14 }
 0x312   :  { %v415_v16 = vmax.f32 %v411_v15, 0.0  ;;  %597 = vrot.lane.b32.xlu2 %v411_v15, %s1210_s21 }
 0x314   :  { %v427_v17 = vpack.c.bf16 %v415_v16, %v415_v16  ;;  %v429_v18 = vrot.slane %v415_v16, 1  ;;  %v419_v43 = vrot.slane %v415_v16, 7  ;;  %v1147_v16 = vld [vmem:[%s1516_s10 + $0x60] sm:$0xff] }
 0x315   :  { %840 = vmatpush.bf16.msrb.mxu1 %v1147_v16  ;;  %v1137_v16 = vld [vmem:[%s1516_s10 + $0x10] sm:$0xff] }
 0x316   :  { %v439_v19 = vunpack.c.l.b16 %v427_v17  ;;  %v433_v24 = vsel %vm167_vm2, %v429_v18, 0.0  ;;  %v423_v45 = vsel %vm156_vm3, 0.0, %v419_v43 }
 0x317   :  { %v412_v20 = vpop.f32.mrf.mxu1  ;;  %v435_v27 = vpack.c.bf16 %v433_v24, %v433_v24  ;;  %v425_v48 = vpack.c.bf16 %v423_v45, %v423_v45 }
 0x318   :  { %v413_v21 = vadd.f32 %v1176_v13, %v412_v20  ;;  %v441_v22 = vpack.c.b16 %v439_v19, %v439_v19 }
 0x319   :  { %v458_v32 = vunpack.c.l.b16 %v435_v27 }
 0x31a   :  { %v416_v23 = vmax.f32 %v413_v21, 0.0  ;;  %443 = vrot.lane.b32.xlu0 %v441_v22, %s1210_s21 }
 0x31c   :  { %v430_v25 = vrot.slane %v416_v23, 1  ;;  %v428_v26 = vpack.c.bf16 %v416_v23, %v416_v23  ;;  %v420_v44 = vrot.slane %v416_v23, 7 }
 0x31e   :  { %v440_v28 = vunpack.c.l.b16 %v428_v26  ;;  %v434_v29 = vsel %vm167_vm2, %v430_v25, 0.0  ;;  %v424_v47 = vsel %vm156_vm3, 0.0, %v420_v44  ;;  %v1146_v25 = vld [vmem:[%s1516_s10 + $0x58] sm:$0xff] }
 0x31f   :  { %v436_v30 = vpack.c.bf16 %v434_v29, %v434_v29  ;;  %v426_v50 = vpack.c.bf16 %v424_v47, %v424_v47  ;;  %841 = vmatpush.bf16.msrb.mxu1 %v1146_v25  ;;  %v1154_v25 = vld [vmem:[%s1518_s12 + $0x18] sm:$0xff] }
 0x320   :  { %v442_v31 = vpack.c.b16 %v440_v28, %v440_v28  ;;  %895 = vmatpush.bf16.msrb.mxu0 %v1154_v25 }
 0x321   :  { %v460_v33 = vunpack.c.l.b16 %v436_v30 }
 0x322   :  { %445 = vrot.lane.b32.xlu1 %v442_v31, %s1210_s21  ;;  %599 = vrot.lane.b32.xlu0 %v413_v21, %s1210_s21 }
 0x323   :  { %v490_v34 = vpack.c.b16 %v460_v33, %v458_v32  ;;  %842 = vmatpush.bf16.msrb.mxu1 %v1145_v37 }
 0x325   :  { %1027 = vmatmul.msk.bf16.vlgmr.msra.gmra.mxu3 %vm199_vm5, %v490_v34 }
 0x36c   :  { %v598_v0 = vpop.permute.xlu2 %597 }
 0x38c   :  { %v444_v46 = vpop.permute.xlu0 %443 }
 0x38d   :  { %v449_v49 = vsel %vm199_vm5, %v425_v48, %v444_v46 }
 0x38e   :  { %v457_v53 = vunpack.c.l.b16 %v449_v49  ;;  %v1144_v49 = vld [vmem:[%s1516_s10 + $0x48] sm:$0xff] }
 0x38f   :  { %843 = vmatpush.bf16.msrb.mxu1 %v1144_v49 }
 0x394   :  { %v446_v51 = vpop.permute.xlu1 %445  ;;  %v600_v17 = vpop.permute.xlu0 %599 }
 0x395   :  { %v452_v52 = vsel %vm199_vm5, %v426_v50, %v446_v51 }
 0x396   :  { %v459_v54 = vunpack.c.l.b16 %v452_v52 }
 0x398   :  { %v489_v55 = vpack.c.b16 %v459_v54, %v457_v53 }
 0x39a   :  { %575 = vmatmul.bf16.vlgmr.msra.gmra.mxu2 %v489_v55 }
 0x3a8   :  { %v590_v57 = vpop.f32.mrf.mxu3 }
 0x3b0   :  { %v592_v9 = vpop.f32.mrf.mxu3 }
 0x41d   :  { %v576_v58 = vpop.f32.mrf.mxu2 }
 0x41e   :  { %v577_v59 = vadd.f32 %v1177_v56, %v576_v58 }
 0x420   :  { %v591_v61 = vadd.f32 %v590_v57, %v577_v59 }
 0x422   :  { %v603_v1 = vadd.f32 %v598_v0, %v591_v61 }
 0x424   :  { %v605_v2 = vmax.f32 %v603_v1, 0.0 }
 0x425   :  { %v578_v4 = vpop.f32.mrf.mxu2 }
 0x426   :  { %v608_v5 = vsel %vm607_vm7, %v605_v2, -inf  ;;  %v638_v6 = vsel %vm637_vm8, %v605_v2, -inf  ;;  %v579_v7 = vadd.f32 %v1177_v56, %v578_v4  ;;  %v653_v8 = vsel %vm652_vm9, %v605_v2, -inf }
 0x427   :  { %v609_v10 = vrot.slane %v608_v5, 4  ;;  %v639_v11 = vrot.slane %v638_v6, 4  ;;  %v654_v12 = vrot.slane %v653_v8, 4  ;;  %v623_v13 = vsel %vm622_vm10, %v605_v2, -inf }
 0x428   :  { %v593_v14 = vadd.f32 %v592_v9, %v579_v7  ;;  %v624_v15 = vrot.slane %v623_v13, 4 }
 0x429   :  { %v655_v18 = vmax.f32 %v653_v8, %v654_v12  ;;  %v640_v19 = vmax.f32 %v638_v6, %v639_v11  ;;  %v610_v21 = vmax.f32 %v608_v5, %v609_v10  ;;  %v1141_v11 = vld [vmem:[%s1516_s10 + $0x30] sm:$0xff]  ;;  %v1143_v12 = vld [vmem:[%s1516_s10 + $0x40] sm:$0xff] }
 0x42a   :  { %v604_v20 = vadd.f32 %v600_v17, %v593_v14  ;;  %v625_v22 = vmax.f32 %v623_v13, %v624_v15  ;;  %825 = vmatpush.bf16.msrb.mxu3 %v1141_v11  ;;  %844 = vmatpush.bf16.msrb.mxu1 %v1143_v12  ;;  %v1140_v13 = vld [vmem:[%s1516_s10 + $0x28] sm:$0xff]  ;;  %v1139_v14 = vld [vmem:[%s1516_s10 + $0x20] sm:$0xff]  ;;  %v1138_v15 = vld [vmem:[%s1516_s10 + $0x18] sm:$0xff] }
 0x42b   :  { %v656_v24 = vrot.slane %v655_v18, 2  ;;  %v641_v26 = vrot.slane %v640_v19, 2  ;;  %v611_v30 = vrot.slane %v610_v21, 2  ;;  %v1136_v17 = vld [vmem:[%s1516_s10 + $0x8] sm:$0xff] }
 0x42c   :  { %v606_v23 = vmax.f32 %v604_v20, 0.0  ;;  %v626_v34 = vrot.slane %v625_v22, 2 }
 0x42d   :  { %v657_v35 = vmax.f32 %v655_v18, %v656_v24  ;;  %v642_v41 = vmax.f32 %v640_v19, %v641_v26  ;;  %v612_v43 = vmax.f32 %v610_v21, %v611_v30  ;;  %v1135_v18 = vld [vmem:[%s1516_s10] sm:$0xff]  ;;  %v1153_v26 = vld [vmem:[%s1518_s12 + $0x10] sm:$0xff] }
 0x42e   :  { %v615_v27 = vsel %vm607_vm7, %v606_v23, -inf  ;;  %v645_v28 = vsel %vm637_vm8, %v606_v23, -inf  ;;  %v660_v29 = vsel %vm652_vm9, %v606_v23, -inf  ;;  %v630_v36 = vsel %vm622_vm10, %v606_v23, -inf  ;;  %826 = vmatpush.bf16.msrb.mxu3 %v1140_v13  ;;  %896 = vmatpush.bf16.msrb.mxu0 %v1153_v26 }
 0x42f   :  { %v616_v31 = vrot.slane %v615_v27, 4  ;;  %v646_v32 = vrot.slane %v645_v28, 4  ;;  %v661_v33 = vrot.slane %v660_v29, 4  ;;  %v631_v39 = vrot.slane %v630_v36, 4 }
 0x430   :  { %v627_v45 = vmax.f32 %v625_v22, %v626_v34  ;;  %v658_v48 = vrot.slane %v657_v35, 1  ;;  %v643_v54 = vrot.slane %v642_v41, 1  ;;  %v613_v56 = vrot.slane %v612_v43, 1 }
 0x431   :  { %v662_v38 = vmax.f32 %v660_v29, %v661_v33  ;;  %v647_v40 = vmax.f32 %v645_v28, %v646_v32  ;;  %v617_v42 = vmax.f32 %v615_v27, %v616_v31  ;;  %v632_v46 = vmax.f32 %v630_v36, %v631_v39  ;;  %v1152_v28 = vld [vmem:[%s1518_s12 + $0x8] sm:$0xff]  ;;  %v1151_v29 = vld [vmem:[%s1518_s12] sm:$0xff]  ;;  %s911_s12 = sshll.u32 %s1211_s28, 4  ;;  %s912_s12 = int_to_ptr.vmem [resolvable:$true] %s911_s12 }
 0x432   :  { %v628_v58 = vrot.slane %v627_v45, 1  ;;  %v659_v61 = vmax.f32 %v657_v35, %v658_v48  ;;  %v644_v2 = vmax.f32 %v642_v41, %v643_v54  ;;  %v614_v4 = vmax.f32 %v612_v43, %v613_v56  ;;  %827 = vmatpush.bf16.msrb.mxu3 %v1139_v14  ;;  %897 = vmatpush.bf16.msrb.mxu0 %v1152_v28  ;;  %v1178_v31 = vld [vmem:[%s1517_s11] ss:$0 sm:$0xff] }
 0x433   :  { %v663_v44 = vrot.slane %v662_v38, 2  ;;  %v648_v47 = vrot.slane %v647_v40, 2  ;;  %v618_v50 = vrot.slane %v617_v42, 2  ;;  %v633_v52 = vrot.slane %v632_v46, 2 }
 0x434   :  { %v629_v6 = vmax.f32 %v627_v45, %v628_v58 }
 0x435   :  { %v664_v51 = vmax.f32 %v662_v38, %v663_v44  ;;  %v649_v53 = vmax.f32 %v647_v40, %v648_v47  ;;  %v619_v55 = vmax.f32 %v617_v42, %v618_v50  ;;  %v634_v59 = vmax.f32 %v632_v46, %v633_v52  ;;  %v1179_v38 = vld [vmem:[%s1519_s13] ss:$0 sm:$0xff] }
 0x436   :  { %828 = vmatpush.bf16.msrb.mxu3 %v1138_v15  ;;  %898 = vmatpush.bf16.msrb.mxu0 %v1151_v29 }
 0x437   :  { %v665_v57 = vrot.slane %v664_v51, 1  ;;  %v650_v60 = vrot.slane %v649_v53, 1  ;;  %v620_v62 = vrot.slane %v619_v55, 1  ;;  %v635_v0 = vrot.slane %v634_v59, 1 }
 0x439   :  { %v666_v63 = vmax.f32 %v664_v51, %v665_v57  ;;  %v651_v1 = vmax.f32 %v649_v53, %v650_v60  ;;  %v621_v3 = vmax.f32 %v619_v55, %v620_v62  ;;  %v636_v7 = vmax.f32 %v634_v59, %v635_v0 }
 0x43a   :  { %829 = vmatpush.bf16.msrb.mxu3 %v1137_v16 }
 0x43b   :  { %v684_v5 = vsel %vm669_vm11, %v666_v63, %v659_v61  ;;  %v680_v8 = vsel %vm669_vm11, %v651_v1, %v644_v2  ;;  %v670_v9 = vsel %vm669_vm11, %v621_v3, %v614_v4  ;;  %v674_v10 = vsel %vm669_vm11, %v636_v7, %v629_v6 }
 0x43c   :  { %685 = vrot.lane.b32.xlu2 %v684_v5, %s1210_s21  ;;  %675 = vrot.lane.b32.xlu1 %v674_v10, %s1210_s21 }
 0x43e   :  { %830 = vmatpush.bf16.msrb.mxu3 %v1136_v17 }
 0x442   :  { %831 = vmatpush.bf16.msrb.mxu3 %v1135_v18 }
 0x496   :  { %v686_v19 = vpop.permute.xlu2 %685 }
 0x497   :  { %v689_v20 = vsel %vm199_vm5, %v680_v8, %v686_v19 }
 0x498   :  { %v691_v21 = vpack.c.bf16 %v689_v20, %v689_v20 }
 0x49a   :  { %845 = vmatmul.bf16.vlgmr.msrb.gmra.mxu1 %v691_v21 }
 0x4ae   :  { %v676_v22 = vpop.permute.xlu1 %675 }
 0x4af   :  { %v688_v23 = vsel %vm199_vm5, %v670_v9, %v676_v22 }
 0x4b0   :  { %v690_v24 = vpack.c.bf16 %v688_v23, %v688_v23 }
 0x4b2   :  { %832 = vmatmul.bf16.vlgmr.msrb.gmra.mxu3 %v690_v24 }
 0x517   :  { %v846_v27 = vpop.f32.mrf.mxu1 }
 0x51f   :  { %v848_v30 = vpop.f32.mrf.mxu1 }
 0x535   :  { %v833_v32 = vpop.f32.mrf.mxu3 }
 0x536   :  { %v834_v33 = vadd.f32 %v1178_v31, %v833_v32 }
 0x538   :  { %v847_v34 = vadd.f32 %v846_v27, %v834_v33 }
 0x53a   :  { %v850_v35 = vmax.f32 %v847_v34, 0.0 }
 0x53c   :  { %v851_v36 = vpack.c.bf16 %v850_v35, %v850_v35 }
 0x53d   :  { %v835_v37 = vpop.f32.mrf.mxu3 }
 0x53e   :  { %1108 = vmatmul.msk.bf16.vlgmr.msrb.gmra.mxu0 %vm199_vm5, %v851_v36 }
 0x5bb   :  { %v900_v39 = vpop.f32.mrf.mxu0 }
 0x5bc   :  { %v901_v40 = vadd.f32 %v1179_v38, %v900_v39 }
 0x5be   :  { %905 = vst.msk [vmem:[#allocation2] sm:$0x3] %vm904_vm12, %v901_v40 }
 0x5bf   :  { %916 = dma.vmem_to_hbm [thread:$0]  %s912_s12, 32, %s914_s6, [#allocation3]  }
 0x5c3   :  { %v902_v41 = vpop.f32.mrf.mxu0 }
 0x5c4   :  { %1204 = dma.done.wait [#allocation3], 32  }
 0x5c5   :  { %1205 = vsyncadd [#allocation3], 4294967264 }
 0x5c6   :  { %921 = vsyncpa [#allocation3], 1 }

</bundles_post_ra>
